<compile_context>
chip_gen: v6e
topology: v6e:2x2x1
jax: 0.10.0
libtpu: 0.0.40
codegen_flags: <defaults>
</compile_context>

<pallas_src>
import jax
import jax.numpy as jnp
from jax import lax
from jax.experimental import pallas as pl
from jax.experimental.pallas import tpu as pltpu


def _wap_kernel(xr_ref, xc_ref, adj_ref, wt_ref, wb_ref, b_ref,
                out_ref, acc_ref):
    """Grid = (node-row tile i [parallel], node-col tile k [arbitrary])."""
    k = pl.program_id(1)

    @pl.when(k == 0)
    def _init():
        acc_ref[...] = jnp.zeros_like(acc_ref)

    # Fused "col endpoint" projection of this column tile of nodes:
    #   lane 0     -> gate_nn contribution of x[col]
    #   lanes 1..H -> message_nn contribution of x[col]
    yb = jnp.dot(xc_ref[...], wb_ref[...],
                 preferred_element_type=jnp.float32)                  # [TK, HP]
    e = jnp.exp(yb[:, :1])                                            # [TK, 1]
    lane = lax.broadcasted_iota(jnp.int32, yb.shape, 1)
    payload = e * jnp.where(lane == 0, 1.0, yb)                       # [TK, HP]
    # payload lane 0 = exp(gate_bot_c); lanes 1..H = exp(gate_bot_c)*msg_bot_c;
    # padded lanes = 0 (weights/bias zero-padded in the wrapper).

    # Segment-sum over `row` expressed as a weighted-adjacency matmul
    # (adj[r, c] = sum over parallel edges r->c of pos[c]).
    acc_ref[...] += jnp.dot(adj_ref[...], payload,
                            preferred_element_type=jnp.float32)       # [TM, HP]

    @pl.when(k == pl.num_programs(1) - 1)
    def _finalize():
        # "row endpoint" projection; gate/message biases are folded in here once.
        yt = jnp.dot(xr_ref[...], wt_ref[...],
                     preferred_element_type=jnp.float32) + b_ref[...]  # [TM, HP]
        g = jnp.exp(yt[:, :1])                # exp(gate_top + bg)       [TM, 1]
        s = acc_ref[:, :1]                    # sum_c pos_c*exp(gate_bot) [TM, 1]
        # rowsum = g * s ; reference computes rowsum**-1 + 1e-10
        inv = pl.reciprocal(g * s, approx=False) + 1e-10
        # lanes 1..H: inv * g * (msg_top * s + sum_c pos_c*exp(gate_bot_c)*msg_bot_c)
        res = inv * g * (yt * s + acc_ref[...])
        # Zero-degree rows (and padded rows): reference scatter yields 0.
        out_ref[...] = jnp.where(s != 0.0, res, 0.0).astype(out_ref.dtype)


def weighted_attention_pooling(x, edge_index, pos, params, *, tile_n=128):
    """x: [N, F] f32, edge_index: [2, E] i32, pos: [N] f32  ->  [N, H] f32."""
    wg, bg, wm, bm = params                      # [2F,1], [1,1], [2F,H], [1,H]
    row, col = edge_index[0], edge_index[1]
    N, F = x.shape
    H = wm.shape[1]

    lanes = 128
    hp = ((1 + H) + lanes - 1) // lanes * lanes      # fused gate+message, lane-padded
    npad = ((N + tile_n - 1) // tile_n) * tile_n     # node axis padded to tile

    # Fuse gate + message heads into one weight: lane 0 = gate, lanes 1..H = message.
    w = jnp.concatenate([wg, wm], axis=1)                              # [2F, 1+H]
    w = jnp.pad(w, ((0, 0), (0, hp - (1 + H))))
    w_top, w_bot = w[:F], w[F:]                         # act on x[row] / x[col]
    bias = jnp.pad(jnp.concatenate([bg, bm], axis=1),
                   ((0, 0), (0, hp - (1 + H))))                        # [1, hp]

    x_p = jnp.pad(x.astype(jnp.float32), ((0, npad - N), (0, 0)))      # [npad, F]

    # O(E) glue: pos-weighted edge-multiplicity adjacency (replaces both the
    # one-hot scatter matrix and the per-col pos input); padded rows/cols are
    # zero -> contribute nothing.
    adj = jnp.zeros((npad, npad), jnp.float32).at[row, col].add(
        pos[col].astype(jnp.float32))

    grid = (npad // tile_n, npad // tile_n)
    out = pl.pallas_call(
        _wap_kernel,
        out_shape=jax.ShapeDtypeStruct((npad, hp), jnp.float32),
        grid_spec=pltpu.PrefetchScalarGridSpec(
            num_scalar_prefetch=0,
            grid=grid,
            in_specs=[
                pl.BlockSpec((tile_n, F), lambda i, k: (i, 0)),        # x  (row endpoint)
                pl.BlockSpec((tile_n, F), lambda i, k: (k, 0)),        # x  (col endpoint)
                pl.BlockSpec((tile_n, tile_n), lambda i, k: (i, k)),   # weighted adjacency
                pl.BlockSpec((F, hp), lambda i, k: (0, 0)),            # W_top (fused)
                pl.BlockSpec((F, hp), lambda i, k: (0, 0)),            # W_bot (fused)
                pl.BlockSpec((1, hp), lambda i, k: (0, 0)),            # fused bias
            ],
            out_specs=pl.BlockSpec((tile_n, hp), lambda i, k: (i, 0)),
            scratch_shapes=[pltpu.VMEM((tile_n, hp), jnp.float32)],
        ),
        compiler_params=pltpu.CompilerParams(
            dimension_semantics=("parallel", "arbitrary")),
    )(x_p, x_p, adj, w_top, w_bot, bias)

    return out[:N, 1:1 + H]


def _reference(x, edge_index, pos, params):
    """Pure-JAX reference matching the PyTorch forward exactly."""
    wg, bg, wm, bm = params
    row, col = edge_index[0], edge_index[1]
    N = x.shape[0]
    xcat = jnp.concatenate([x[row], x[col]], axis=-1)
    alpha = xcat @ wg + bg                                             # gate_nn
    weights = pos[col][:, None]
    alpha = jnp.exp(alpha)
    alpha = weights * alpha
    rowsum = jax.ops.segment_sum(alpha, row, num_segments=N)
    inv = rowsum ** -1 + 1e-10
    alpha = alpha * inv[row]
    beta = xcat @ wm + bm                                              # message_nn
    return jax.ops.segment_sum(alpha * beta, row, num_segments=N)


def _xavier_uniform(key, shape):
    fan_in, fan_out = shape[0], shape[1]
    bound = (6.0 / (fan_in + fan_out)) ** 0.5
    return jax.random.uniform(key, shape, jnp.float32, -bound, bound)


def _make_params(key, F, H):
    kg, km, kbg, kbm = jax.random.split(key, 4)
    return (
        _xavier_uniform(kg, (2 * F, 1)),                      # gate_nn weight
        0.1 * jax.random.normal(kbg, (1, 1), jnp.float32),    # gate_nn bias
        _xavier_uniform(km, (2 * F, H)),                      # message_nn weight
        0.1 * jax.random.normal(kbm, (1, H), jnp.float32),    # message_nn bias
    )


if __name__ == "__main__":
    key = jax.random.PRNGKey(0)
    k1, k2 = jax.random.split(key)

    # --- Test 1: small deterministic ring graph (single-tile grid) -----------
    kx, kp, kparam = jax.random.split(k1, 3)
    N, F, H = 8, 16, 16
    row = jnp.repeat(jnp.arange(N, dtype=jnp.int32), 4)
    col = (row + jnp.tile(jnp.arange(1, 5, dtype=jnp.int32), N)) % N
    edge_index = jnp.stack([row, col])                                 # [2, 32]

    x = jax.random.normal(kx, (N, F), jnp.float32)
    pos = jax.random.uniform(kp, (N,), jnp.float32, 0.1, 1.0)
    params = _make_params(kparam, F, H)

    out = jax.block_until_ready(weighted_attention_pooling(x, edge_index, pos, params))
    ref = _reference(x, edge_index, pos, params)
    assert out.shape == (N, H)
    assert jnp.allclose(out, ref, atol=1e-5, rtol=1e-4), "mismatch vs reference (small)"

    # --- Test 2: random graph exercising a multi-tile (2x2) grid -------------
    kx, kp, ke1, ke2, kparam = jax.random.split(k2, 5)
    N2, F2, H2, E2 = 200, 32, 24, 800
    row2 = jax.random.randint(ke1, (E2,), 0, N2, jnp.int32)
    col2 = jax.random.randint(ke2, (E2,), 0, N2, jnp.int32)
    edge_index2 = jnp.stack([row2, col2])

    x2 = jax.random.normal(kx, (N2, F2), jnp.float32)
    pos2 = jax.random.uniform(kp, (N2,), jnp.float32, 0.1, 1.0)
    params2 = _make_params(kparam, F2, H2)

    out2 = jax.block_until_ready(
        weighted_attention_pooling(x2, edge_index2, pos2, params2, tile_n=128))
    ref2 = _reference(x2, edge_index2, pos2, params2)
    assert out2.shape == (N2, H2)
    assert jnp.allclose(out2, ref2, atol=1e-5, rtol=1e-4), "mismatch vs reference (multi-tile)"

    print("KERNEL_OK")
</pallas_src>

<mosaic_0001>
module attributes {stable_mosaic.version = 11 : i64} {
  func.func @_wap_kernel(%arg0: i32, %arg1: i32, %arg2: memref<128x16xf32, #tpu.memory_space<vmem>>, %arg3: memref<128x16xf32, #tpu.memory_space<vmem>>, %arg4: memref<128x128xf32, #tpu.memory_space<vmem>>, %arg5: memref<16x128xf32, #tpu.memory_space<vmem>>, %arg6: memref<16x128xf32, #tpu.memory_space<vmem>>, %arg7: memref<1x128xf32, #tpu.memory_space<vmem>>, %arg8: memref<128x128xf32, #tpu.memory_space<vmem>>, %arg9: memref<128x128xf32, #tpu.memory_space<vmem>>) attributes {dimension_semantics = [#tpu.dimension_semantics<parallel>, #tpu.dimension_semantics<arbitrary>], iteration_bounds = array<i64: 1, 1>, scalar_prefetch = 0 : i64, scratch_operands = 1 : i64, tpu.core_type = #tpu.core_type<tc>, window_params = [{transform_indices = @transform_0, window_bounds = array<i64: 128, 16>}, {transform_indices = @transform_1, window_bounds = array<i64: 128, 16>}, {transform_indices = @transform_2, window_bounds = array<i64: 128, 128>}, {pipeline_mode = #tpu.pipeline_mode<synchronous>, transform_indices = @transform_3, window_bounds = array<i64: 16, 128>}, {pipeline_mode = #tpu.pipeline_mode<synchronous>, transform_indices = @transform_4, window_bounds = array<i64: 16, 128>}, {pipeline_mode = #tpu.pipeline_mode<synchronous>, transform_indices = @transform_5, window_bounds = array<i64: 1, 128>}, {transform_indices = @transform_6, window_bounds = array<i64: 128, 128>}]} {
    %c0_i32 = arith.constant 0 : i32
    %0 = arith.cmpi eq, %arg1, %c0_i32 : i32
    %1 = arith.extui %0 : i1 to i32
    %c0_i32_0 = arith.constant 0 : i32
    %2 = arith.cmpi ne, %1, %c0_i32_0 : i32
    scf.if %2 {
      %cst_15 = arith.constant 0.000000e+00 : f32
      %23 = vector.broadcast %cst_15 : f32 to vector<128x128xf32>
      %c0_16 = arith.constant 0 : index
      %c0_17 = arith.constant 0 : index
      %24 = vector.load %arg9[%c0_16, %c0_17] : memref<128x128xf32, #tpu.memory_space<vmem>>, vector<128x128xf32>
      tpu.vector_store %arg9[%c0_16, %c0_17], %23 {strides = array<i32>} : memref<128x128xf32, #tpu.memory_space<vmem>>, vector<128x128xf32>,
    } else {
    }
    %c0 = arith.constant 0 : index
    %c0_1 = arith.constant 0 : index
    %3 = vector.load %arg3[%c0, %c0_1] : memref<128x16xf32, #tpu.memory_space<vmem>>, vector<128x16xf32>
    %c0_2 = arith.constant 0 : index
    %c0_3 = arith.constant 0 : index
    %4 = vector.load %arg6[%c0_2, %c0_3] : memref<16x128xf32, #tpu.memory_space<vmem>>, vector<16x128xf32>
    %cst = arith.constant dense<0.000000e+00> : vector<128x128xf32>
    %5 = tpu.matmul %3, %4, %cst {dimension_numbers = #tpu.dot_dimension_numbers<[1], [0], [0], [1], [0, 0, 1, 1], [], []>} : vector<128x16xf32>, vector<16x128xf32>, vector<128x128xf32> -> vector<128x128xf32>
    %6 = vector.extract_strided_slice %5 {offsets = [0, 0], sizes = [128, 1], strides = [1, 1]} : vector<128x128xf32> to vector<128x1xf32>
    %7 = math.exp %6 : vector<128x1xf32>
    %8 = tpu.iota {dimensions = array<i32: 1>} : vector<128x128xi32>
    %c0_i32_4 = arith.constant 0 : i32
    %9 = vector.broadcast %c0_i32_4 : i32 to vector<128x128xi32>
    %10 = arith.cmpi eq, %8, %9 : vector<128x128xi32>
    %cst_5 = arith.constant 1.000000e+00 : f32
    %11 = vector.broadcast %cst_5 : f32 to vector<128x128xf32>
    %12 = arith.select %10, %11, %5 : vector<128x128xi1>, vector<128x128xf32>
    %13 = vector.broadcast %7 : vector<128x1xf32> to vector<128x128xf32>
    %14 = arith.mulf %13, %12 : vector<128x128xf32>
    %c0_6 = arith.constant 0 : index
    %c0_7 = arith.constant 0 : index
    %15 = vector.load %arg9[%c0_6, %c0_7] : memref<128x128xf32, #tpu.memory_space<vmem>>, vector<128x128xf32>
    %c0_8 = arith.constant 0 : index
    %c0_9 = arith.constant 0 : index
    %16 = vector.load %arg4[%c0_8, %c0_9] : memref<128x128xf32, #tpu.memory_space<vmem>>, vector<128x128xf32>
    %cst_10 = arith.constant dense<0.000000e+00> : vector<128x128xf32>
    %17 = tpu.matmul %16, %14, %cst_10 {dimension_numbers = #tpu.dot_dimension_numbers<[1], [0], [0], [1], [0, 0, 1, 1], [], []>} : vector<128x128xf32>, vector<128x128xf32>, vector<128x128xf32> -> vector<128x128xf32>
    %18 = arith.addf %15, %17 : vector<128x128xf32>
    %c0_11 = arith.constant 0 : index
    %c0_12 = arith.constant 0 : index
    %19 = vector.load %arg9[%c0_11, %c0_12] : memref<128x128xf32, #tpu.memory_space<vmem>>, vector<128x128xf32>
    tpu.vector_store %arg9[%c0_11, %c0_12], %18 {strides = array<i32>} : memref<128x128xf32, #tpu.memory_space<vmem>>, vector<128x128xf32>,
    %c0_i32_13 = arith.constant 0 : i32
    %20 = arith.cmpi eq, %arg1, %c0_i32_13 : i32
    %21 = arith.extui %20 : i1 to i32
    %c0_i32_14 = arith.constant 0 : i32
    %22 = arith.cmpi ne, %21, %c0_i32_14 : i32
    scf.if %22 {
      %c0_15 = arith.constant 0 : index
      %c0_16 = arith.constant 0 : index
      %23 = vector.load %arg2[%c0_15, %c0_16] : memref<128x16xf32, #tpu.memory_space<vmem>>, vector<128x16xf32>
      %c0_17 = arith.constant 0 : index
      %c0_18 = arith.constant 0 : index
      %24 = vector.load %arg5[%c0_17, %c0_18] : memref<16x128xf32, #tpu.memory_space<vmem>>, vector<16x128xf32>
      %cst_19 = arith.constant dense<0.000000e+00> : vector<128x128xf32>
      %25 = tpu.matmul %23, %24, %cst_19 {dimension_numbers = #tpu.dot_dimension_numbers<[1], [0], [0], [1], [0, 0, 1, 1], [], []>} : vector<128x16xf32>, vector<16x128xf32>, vector<128x128xf32> -> vector<128x128xf32>
      %c0_20 = arith.constant 0 : index
      %c0_21 = arith.constant 0 : index
      %26 = vector.load %arg7[%c0_20, %c0_21] : memref<1x128xf32, #tpu.memory_space<vmem>>, vector<1x128xf32>
      %27 = vector.broadcast %26 : vector<1x128xf32> to vector<128x128xf32>
      %28 = arith.addf %25, %27 : vector<128x128xf32>
      %29 = vector.extract_strided_slice %28 {offsets = [0, 0], sizes = [128, 1], strides = [1, 1]} : vector<128x128xf32> to vector<128x1xf32>
      %30 = math.exp %29 : vector<128x1xf32>
      %c0_22 = arith.constant 0 : index
      %c0_23 = arith.constant 0 : index
      %31 = vector.load %arg9[%c0_22, %c0_23] : memref<128x128xf32, #tpu.memory_space<vmem>>, vector<128x1xf32>
      %32 = arith.mulf %30, %31 : vector<128x1xf32>
      %33 = tpu.reciprocal %32 : vector<128x1xf32> -> vector<128x1xf32>
      %cst_24 = arith.constant 1.000000e-10 : f32
      %34 = vector.broadcast %cst_24 : f32 to vector<128x1xf32>
      %35 = arith.addf %33, %34 : vector<128x1xf32>
      %36 = arith.mulf %35, %30 : vector<128x1xf32>
      %37 = vector.broadcast %31 : vector<128x1xf32> to vector<128x128xf32>
      %38 = arith.mulf %28, %37 : vector<128x128xf32>
      %c0_25 = arith.constant 0 : index
      %c0_26 = arith.constant 0 : index
      %39 = vector.load %arg9[%c0_25, %c0_26] : memref<128x128xf32, #tpu.memory_space<vmem>>, vector<128x128xf32>
      %40 = arith.addf %38, %39 : vector<128x128xf32>
      %41 = vector.broadcast %36 : vector<128x1xf32> to vector<128x128xf32>
      %42 = arith.mulf %41, %40 : vector<128x128xf32>
      %cst_27 = arith.constant 0.000000e+00 : f32
      %43 = vector.broadcast %cst_27 : f32 to vector<128x1xf32>
      %44 = arith.cmpf one, %31, %43 : vector<128x1xf32>
      %cst_28 = arith.constant 0.000000e+00 : f32
      %45 = vector.shape_cast %44 : vector<128x1xi1> to vector<128x1xi1>
      %46 = vector.broadcast %45 : vector<128x1xi1> to vector<128x128xi1>
      %47 = vector.broadcast %cst_28 : f32 to vector<128x128xf32>
      %48 = arith.select %46, %42, %47 : vector<128x128xi1>, vector<128x128xf32>
      %c0_29 = arith.constant 0 : index
      %c0_30 = arith.constant 0 : index
      %49 = vector.load %arg8[%c0_29, %c0_30] : memref<128x128xf32, #tpu.memory_space<vmem>>, vector<128x128xf32>
      tpu.vector_store %arg8[%c0_29, %c0_30], %48 {strides = array<i32>} : memref<128x128xf32, #tpu.memory_space<vmem>>, vector<128x128xf32>,
    } else {
    }
    return
  }
  func.func @transform_0(%arg0: i32, %arg1: i32) -> (i32, i32) {
    %c0_i32 = arith.constant 0 : i32
    %c0_i32_0 = arith.constant 0 : i32
    return %arg0, %c0_i32 : i32, i32
  }
  func.func @transform_1(%arg0: i32, %arg1: i32) -> (i32, i32) {
    %c0_i32 = arith.constant 0 : i32
    %c0_i32_0 = arith.constant 0 : i32
    return %arg1, %c0_i32 : i32, i32
  }
  func.func @transform_2(%arg0: i32, %arg1: i32) -> (i32, i32) {
    %c0_i32 = arith.constant 0 : i32
    return %arg0, %arg1 : i32, i32
  }
  func.func @transform_3(%arg0: i32, %arg1: i32) -> (i32, i32) {
    %c0_i32 = arith.constant 0 : i32
    %c0_i32_0 = arith.constant 0 : i32
    %c0_i32_1 = arith.constant 0 : i32
    return %c0_i32, %c0_i32_0 : i32, i32
  }
  func.func @transform_4(%arg0: i32, %arg1: i32) -> (i32, i32) {
    %c0_i32 = arith.constant 0 : i32
    %c0_i32_0 = arith.constant 0 : i32
    %c0_i32_1 = arith.constant 0 : i32
    return %c0_i32, %c0_i32_0 : i32, i32
  }
  func.func @transform_5(%arg0: i32, %arg1: i32) -> (i32, i32) {
    %c0_i32 = arith.constant 0 : i32
    %c0_i32_0 = arith.constant 0 : i32
    %c0_i32_1 = arith.constant 0 : i32
    return %c0_i32, %c0_i32_0 : i32, i32
  }
  func.func @transform_6(%arg0: i32, %arg1: i32) -> (i32, i32) {
    %c0_i32 = arith.constant 0 : i32
    %c0_i32_0 = arith.constant 0 : i32
    return %arg0, %c0_i32 : i32, i32
  }
}

</mosaic_0001>

<bundles_post_ra>
// kernel: tpu_custom_call.1
= control target key start
LH: loop header
LB: loop body
LE: loop exit
PB: predicated region body
PF: predicated region fallthrough
CT: control target
= control target key end

     0   :  { %vm62_vm0 = vcmask 130048   ;;  %s2258_s0 = inlined_call_operand.vmem [shape: f32[128,16], index: 0, kind: input, shape index: {}]   ;;  %s2259_s1 = inlined_call_operand.vmem [shape: f32[128,16], index: 1, kind: input, shape index: {}]   ;;  %s2260_s2 = inlined_call_operand.vmem [shape: f32[128,128], index: 2, kind: input, shape index: {}]   ;;  %s2261_s3 = inlined_call_operand.vmem [shape: f32[16,128], index: 3, kind: input, shape index: {}]   ;;  %s2262_s4 = inlined_call_operand.vmem [shape: f32[16,128], index: 4, kind: input, shape index: {}]   ;;  %s2263_s5 = inlined_call_operand.vmem [shape: f32[1,128], index: 5, kind: input, shape index: {}]   ;;  %s2264_s6 = inlined_call_operand.hbm [shape: f32[128,128], index: 6, kind: output, shape index: {}]  }
   0x1   :  { %v61_v0 = vld [vmem:[%s2262_s4 + $0x8] sm:$0xff]  ;;  %v60_v1 = vld [vmem:[%s2262_s4] sm:$0xff]  ;;  %v46_v4 = vld [vmem:[%s2259_s1 + $0x10] sm:$0xff] }
   0x2   :  { %v44_v2 = vld [vmem:[%s2259_s1] sm:$0xff]  ;;  %1398 = vmatprep.subr.mxu0 %v61_v0  ;;  %v45_v3 = vld [vmem:[%s2259_s1 + $0x8] sm:$0xff]  ;;  %v47_v5 = vld [vmem:[%s2259_s1 + $0x18] sm:$0xff] }
   0x3   :  { %1402 = vmatprep.mubr.msk.f32.mxu0 %vm62_vm0, %v44_v2  ;;  %1399 = vmatpush3.msra.mxu0 %v61_v0 }
   0x4   :  { %1400 = vmatprep.subr.mxu0 %v60_v1 }
   0x5   :  { %1401 = vmatpush3.msra.mxu0 %v60_v1 }
   0x6   :  { %1403 = vmatmul.mubr.msk.f32.vlgmr.msra.gmra.mxu0 %vm62_vm0, %v45_v3 }
   0x7   :  { %1405 = vmatprep.mubr.msk.f32.mxu0 %vm62_vm0, %v46_v4 }
   0x8   :  { %11 = vsyncpa [#allocation4], 0  ;;  %v48_v6 = vld [vmem:[%s2259_s1 + $0x20] sm:$0xff]  ;;  %v49_v7 = vld [vmem:[%s2259_s1 + $0x28] sm:$0xff]  ;;  %v1634_v18 = vmov 0  }
   0x9   :  { %v50_v8 = vld [vmem:[%s2259_s1 + $0x30] sm:$0xff]  ;;  %v51_v9 = vld [vmem:[%s2259_s1 + $0x38] sm:$0xff]  ;;  %v52_v10 = vld [vmem:[%s2259_s1 + $0x40] sm:$0xff]  ;;  %1515 = vset.pattern.permute.xlu1 %v1634_v18  ;;  %1514 = vset.pattern.permute.xlu0 %v1634_v18 }
   0xa   :  { %1406 = vmatmul.mubr.msk.f32.gmra.mxu0 %vm62_vm0, %v47_v5  ;;  %v53_v11 = vld [vmem:[%s2259_s1 + $0x48] sm:$0xff]  ;;  %v54_v12 = vld [vmem:[%s2259_s1 + $0x50] sm:$0xff]  ;;  %v55_v13 = vld [vmem:[%s2259_s1 + $0x58] sm:$0xff] }
   0xb   :  { %1408 = vmatprep.mubr.msk.f32.mxu0 %vm62_vm0, %v48_v6  ;;  %v56_v14 = vld [vmem:[%s2259_s1 + $0x60] sm:$0xff]  ;;  %v57_v15 = vld [vmem:[%s2259_s1 + $0x68] sm:$0xff]  ;;  %v58_v16 = vld [vmem:[%s2259_s1 + $0x70] sm:$0xff] }
   0xc   :  { %v59_v17 = vld [vmem:[%s2259_s1 + $0x78] sm:$0xff]  ;;  %v632_v54 = vld [vmem:[%s2261_s3 + $0x8] sm:$0xff]  ;;  %v631_v61 = vld [vmem:[%s2261_s3] sm:$0xff] }
   0xd   :  { %1482 = vmatprep.subr.mxu0 %v632_v54  ;;  %v615_v62 = vld [vmem:[%s2258_s0] sm:$0xff]  ;;  %v616_v63 = vld [vmem:[%s2258_s0 + $0x8] sm:$0xff]  ;;  %v617_v3 = vld [vmem:[%s2258_s0 + $0x10] sm:$0xff] }
   0xe   :  { %1409 = vmatmul.mubr.msk.f32.gmra.mxu0 %vm62_vm0, %v49_v7  ;;  %v618_v5 = vld [vmem:[%s2258_s0 + $0x18] sm:$0xff] }
   0xf   :  { %1411 = vmatprep.mubr.msk.f32.mxu0 %vm62_vm0, %v50_v8  ;;  %1483 = vmatpush3.msra.mxu0 %v632_v54  ;;  %v619_v8 = vld [vmem:[%s2258_s0 + $0x20] sm:$0xff] }
  0x10   :  { %1484 = vmatprep.subr.mxu0 %v631_v61 }
  0x11   :  { %1485 = vmatpush3.msra.mxu0 %v631_v61 }
  0x12   :  { %1412 = vmatmul.mubr.msk.f32.gmra.mxu0 %vm62_vm0, %v51_v9 }
  0x13   :  { %1414 = vmatprep.mubr.msk.f32.mxu0 %vm62_vm0, %v52_v10  ;;  %v620_v10 = vld [vmem:[%s2258_s0 + $0x28] sm:$0xff] }
  0x16   :  { %1415 = vmatmul.mubr.msk.f32.gmra.mxu0 %vm62_vm0, %v53_v11  ;;  %v419_v11 = vld [vmem:[%s2260_s2] sm:$0xff] }
  0x17   :  { %1417 = vmatprep.mubr.msk.f32.mxu0 %vm62_vm0, %v54_v12  ;;  %1458 = vmatprep.mubr.f32.mxu1 %v419_v11  ;;  %v621_v12 = vld [vmem:[%s2258_s0 + $0x30] sm:$0xff] }
  0x1a   :  { %1418 = vmatmul.mubr.msk.f32.gmra.mxu0 %vm62_vm0, %v55_v13  ;;  %v622_v13 = vld [vmem:[%s2258_s0 + $0x38] sm:$0xff] }
  0x1b   :  { %1420 = vmatprep.mubr.msk.f32.mxu0 %vm62_vm0, %v56_v14  ;;  %v623_v14 = vld [vmem:[%s2258_s0 + $0x40] sm:$0xff] }
  0x1e   :  { %1421 = vmatmul.mubr.msk.f32.gmra.mxu0 %vm62_vm0, %v57_v15  ;;  %v624_v15 = vld [vmem:[%s2258_s0 + $0x48] sm:$0xff] }
  0x1f   :  { %1423 = vmatprep.mubr.msk.f32.mxu0 %vm62_vm0, %v58_v16  ;;  %v625_v16 = vld [vmem:[%s2258_s0 + $0x50] sm:$0xff] }
  0x22   :  { %1424 = vmatmul.mubr.msk.f32.gmra.mxu0 %vm62_vm0, %v59_v17  ;;  %v626_v17 = vld [vmem:[%s2258_s0 + $0x58] sm:$0xff] }
  0x23   :  { %1486 = vmatprep.mubr.msk.f32.mxu0 %vm62_vm0, %v615_v62 }
  0x26   :  { %1487 = vmatmul.mubr.msk.f32.vlgmr.msra.gmra.mxu0 %vm62_vm0, %v616_v63 }
  0x27   :  { %1489 = vmatprep.mubr.msk.f32.mxu0 %vm62_vm0, %v617_v3 }
  0x2a   :  { %1490 = vmatmul.mubr.msk.f32.gmra.mxu0 %vm62_vm0, %v618_v5 }
  0x2b   :  { %1492 = vmatprep.mubr.msk.f32.mxu0 %vm62_vm0, %v619_v8 }
  0x2e   :  { %1493 = vmatmul.mubr.msk.f32.gmra.mxu0 %vm62_vm0, %v620_v10 }
  0x2f   :  { %1495 = vmatprep.mubr.msk.f32.mxu0 %vm62_vm0, %v621_v12  ;;  %v423_v12 = vld [vmem:[%s2260_s2 + $0x20] sm:$0xff] }
  0x32   :  { %1496 = vmatmul.mubr.msk.f32.gmra.mxu0 %vm62_vm0, %v622_v13  ;;  %v424_v13 = vld [vmem:[%s2260_s2 + $0x28] sm:$0xff] }
  0x33   :  { %1498 = vmatprep.mubr.msk.f32.mxu0 %vm62_vm0, %v623_v14  ;;  %v425_v14 = vld [vmem:[%s2260_s2 + $0x30] sm:$0xff] }
  0x36   :  { %1499 = vmatmul.mubr.msk.f32.gmra.mxu0 %vm62_vm0, %v624_v15  ;;  %v426_v15 = vld [vmem:[%s2260_s2 + $0x38] sm:$0xff] }
  0x37   :  { %1501 = vmatprep.mubr.msk.f32.mxu0 %vm62_vm0, %v625_v16  ;;  %v427_v16 = vld [vmem:[%s2260_s2 + $0x40] sm:$0xff] }
  0x3a   :  { %1502 = vmatmul.mubr.msk.f32.gmra.mxu0 %vm62_vm0, %v626_v17  ;;  %v428_v17 = vld [vmem:[%s2260_s2 + $0x48] sm:$0xff] }
  0xc6   :  { %v1745_v19 = vpop.f32.mrf.mxu0 }
  0xc7   :  { %v258_v59 = vmul.f32 1.442695, %v1745_v19 }
  0xc8   :  { %v1747_v20 = vpop.f32.mrf.mxu0 }
  0xc9   :  { %v256_v53 = vmul.f32 1.442695, %v1747_v20 }
  0xca   :  { %v1749_v21 = vpop.f32.mrf.mxu0 }
  0xcb   :  { %v262_v56 = vmul.f32 1.442695, %v1749_v21 }
  0xcc   :  { %v1751_v22 = vpop.f32.mrf.mxu0 }
  0xcd   :  { %v260_v49 = vmul.f32 1.442695, %v1751_v22 }
  0xce   :  { %v1753_v23 = vpop.f32.mrf.mxu0 }
  0xcf   :  { %v266_v51 = vmul.f32 1.442695, %v1753_v23 }
  0xd0   :  { %v1755_v24 = vpop.f32.mrf.mxu0 }
  0xd1   :  { %v264_v45 = vmul.f32 1.442695, %v1755_v24 }
  0xd2   :  { %v1757_v25 = vpop.f32.mrf.mxu0 }
  0xd3   :  { %v270_v47 = vmul.f32 1.442695, %v1757_v25 }
  0xd4   :  { %v1759_v26 = vpop.f32.mrf.mxu0 }
  0xd5   :  { %v268_v42 = vmul.f32 1.442695, %v1759_v26 }
  0xd6   :  { %v1761_v27 = vpop.f32.mrf.mxu0 }
  0xd7   :  { %v274_v43 = vmul.f32 1.442695, %v1761_v27 }
  0xd8   :  { %v1763_v28 = vpop.f32.mrf.mxu0 }
  0xd9   :  { %v272_v40 = vmul.f32 1.442695, %v1763_v28 }
  0xda   :  { %v1765_v29 = vpop.f32.mrf.mxu0 }
  0xdb   :  { %v278_v41 = vmul.f32 1.442695, %v1765_v29 }
  0xdc   :  { %v1767_v30 = vpop.f32.mrf.mxu0 }
  0xdd   :  { %v276_v37 = vmul.f32 1.442695, %v1767_v30 }
  0xde   :  { %v1769_v31 = vpop.f32.mrf.mxu0 }
  0xdf   :  { %v282_v32 = vmul.f32 1.442695, %v1769_v31 }
  0xe0   :  { %v1772_v33 = vpop.f32.mrf.mxu0 }
  0xe1   :  { %1516 = vpow2.f32 %v282_v32  ;;  %v280_v34 = vmul.f32 1.442695, %v1772_v33  ;;  %v627_v32 = vld [vmem:[%s2258_s0 + $0x60] sm:$0xff] }
  0xe2   :  { %v1775_v35 = vpop.f32.mrf.mxu0  ;;  %1504 = vmatprep.mubr.msk.f32.mxu0 %vm62_vm0, %v627_v32  ;;  %v429_v32 = vld [vmem:[%s2260_s2 + $0x50] sm:$0xff] }
  0xe3   :  { %v286_v36 = vmul.f32 1.442695, %v1775_v35  ;;  %1518 = vpow2.f32 %v280_v34  ;;  %v628_v34 = vld [vmem:[%s2258_s0 + $0x68] sm:$0xff] }
  0xe4   :  { %v1779_v38 = vpop.f32.mrf.mxu0  ;;  %1505 = vmatmul.mubr.msk.f32.gmra.mxu0 %vm62_vm0, %v628_v34  ;;  %v430_v34 = vld [vmem:[%s2260_s2 + $0x58] sm:$0xff] }
  0xe5   :  { %1520 = vpow2.f32 %v286_v36  ;;  %v284_v39 = vmul.f32 1.442695, %v1779_v38  ;;  %v629_v36 = vld [vmem:[%s2258_s0 + $0x70] sm:$0xff] }
  0xe6   :  { %1522 = vpow2.f32 %v276_v37  ;;  %1507 = vmatprep.mubr.msk.f32.mxu0 %vm62_vm0, %v629_v36  ;;  %v630_v37 = vld [vmem:[%s2258_s0 + $0x78] sm:$0xff]  ;;  %v431_v36 = vld [vmem:[%s2260_s2 + $0x60] sm:$0xff] }
  0xe7   :  { %1524 = vpow2.f32 %v284_v39  ;;  %v288_v39 = vlaneseq }
  0xe8   :  { %1526 = vpow2.f32 %v272_v40  ;;  %1508 = vmatmul.mubr.msk.f32.gmra.mxu0 %vm62_vm0, %v630_v37  ;;  %v432_v37 = vld [vmem:[%s2260_s2 + $0x68] sm:$0xff] }
  0xe9   :  { %1528 = vpow2.f32 %v278_v41  ;;  %v1866_v40 = vand.u32 127, %v288_v39  ;;  %v433_v39 = vld [vmem:[%s2260_s2 + $0x70] sm:$0xff] }
  0xea   :  { %1530 = vpow2.f32 %v268_v42 }
  0xeb   :  { %1532 = vpow2.f32 %v274_v43  ;;  %vm290_vm1 = vcmp.eq.s32.totalorder %v1866_v40, 0  ;;  %v434_v40 = vld [vmem:[%s2260_s2 + $0x78] sm:$0xff] }
  0xec   :  { %1534 = vpow2.f32 %v264_v45  ;;  %v306_v43 = vsel %vm290_vm1, 1.0, %v1775_v35  ;;  %v303_v35 = vsel %vm290_vm1, 1.0, %v1772_v33  ;;  %v298_v62 = vsel %vm290_vm1, 1.0, %v1757_v25 }
  0xed   :  { %1536 = vpow2.f32 %v270_v47  ;;  %v305_v47 = vsel %vm290_vm1, 1.0, %v1779_v38  ;;  %v302_v38 = vsel %vm290_vm1, 1.0, %v1765_v29  ;;  %v299_v29 = vsel %vm290_vm1, 1.0, %v1763_v28 }
  0xee   :  { %v1517_v44 = vpop.eup %1516  ;;  %1538 = vpow2.f32 %v260_v49  ;;  %v296_v28 = vsel %vm290_vm1, 1.0, %v1753_v23  ;;  %v295_v25 = vsel %vm290_vm1, 1.0, %v1755_v24  ;;  %v293_v23 = vsel %vm290_vm1, 1.0, %v1751_v22  ;;  %v420_v22 = vld [vmem:[%s2260_s2 + $0x8] sm:$0xff] }
  0xef   :  { %374 = vperm.xlu1 %1515, %v1517_v44   ;;  %1540 = vpow2.f32 %v266_v51 }
  0xf0   :  { %v1519_v46 = vpop.eup %1518  ;;  %1542 = vpow2.f32 %v256_v53 }
  0xf1   :  { %1544 = vpow2.f32 %v262_v56 }
  0xf2   :  { %v1521_v48 = vpop.eup %1520  ;;  %1546 = vpow2.f32 %v258_v59 }
  0xf3   :  { %369 = vperm.xlu1 %1515, %v1519_v46   ;;  %384 = vperm.xlu0 %1514, %v1521_v48   ;;  %v1523_v50 = vpop.eup %1522 }
  0xf4   :  { %v1525_v52 = vpop.eup %1524 }
  0xf5   :  { %v1527_v55 = vpop.eup %1526 }
  0xf6   :  { %v1529_v57 = vpop.eup %1528 }
  0xf7   :  { %359 = vperm.xlu1 %1515, %v1523_v50   ;;  %379 = vperm.xlu0 %1514, %v1525_v52   ;;  %v1531_v58 = vpop.eup %1530  ;;  %v304_v50 = vsel %vm290_vm1, 1.0, %v1769_v31  ;;  %v301_v31 = vsel %vm290_vm1, 1.0, %v1767_v30 }
  0xf8   :  { %v1533_v60 = vpop.eup %1532 }
  0xf9   :  { %v1535_v0 = vpop.eup %1534 }
  0xfa   :  { %v1537_v1 = vpop.eup %1536 }
  0xfb   :  { %349 = vperm.xlu1 %1515, %v1527_v55   ;;  %364 = vperm.xlu0 %1514, %v1529_v57   ;;  %v1539_v2 = vpop.eup %1538 }
  0xfc   :  { %v1541_v4 = vpop.eup %1540 }
  0xfd   :  { %v1543_v6 = vpop.eup %1542 }
  0xfe   :  { %v1545_v7 = vpop.eup %1544 }
  0xff   :  { %339 = vperm.xlu1 %1515, %v1531_v58   ;;  %354 = vperm.xlu0 %1514, %v1533_v60   ;;  %v1547_v9 = vpop.eup %1546  ;;  %v300_v58 = vsel %vm290_vm1, 1.0, %v1761_v27  ;;  %v297_v27 = vsel %vm290_vm1, 1.0, %v1759_v26  ;;  %v294_v26 = vsel %vm290_vm1, 1.0, %v1749_v21  ;;  %v291_v21 = vsel %vm290_vm1, 1.0, %v1747_v20  ;;  %v422_v20 = vld [vmem:[%s2260_s2 + $0x18] sm:$0xff] }
 0x103   :  { %329 = vperm.xlu1 %1515, %v1535_v0   ;;  %344 = vperm.xlu0 %1514, %v1537_v1  }
 0x107   :  { %319 = vperm.xlu1 %1515, %v1539_v2   ;;  %334 = vperm.xlu0 %1514, %v1541_v4  }
 0x10b   :  { %309 = vperm.xlu1 %1515, %v1543_v6   ;;  %324 = vperm.xlu0 %1514, %v1545_v7  }
 0x10f   :  { %314 = vperm.xlu0 %1514, %v1547_v9   ;;  %v292_v9 = vsel %vm290_vm1, 1.0, %v1745_v19  ;;  %v421_v19 = vld [vmem:[%s2260_s2 + $0x10] sm:$0xff]  ;;  %s1635_s2 = smov [#allocation3]  }
 0x16a   :  { %v375_v41 = vpop.permute.xlu1 %374 }
 0x16b   :  { %v400_v51 = vmul.f32 %v375_v41, %v304_v50  ;;  %v1488_v41 = vpop.f32.mrf.mxu0 }
 0x16e   :  { %v370_v42 = vpop.permute.xlu1 %369  ;;  %v385_v44 = vpop.permute.xlu0 %384 }
 0x16f   :  { %v402_v45 = vmul.f32 %v385_v44, %v306_v43  ;;  %v399_v54 = vmul.f32 %v370_v42, %v303_v35  ;;  %v1965_v42 = vld [vmem:[%s2263_s5] ss:$0 sm:$0xff]  ;;  %v754_v43 = vpop.f32.mrf.mxu0  ;;  %s1286_s5 = sshll.u32 %s1635_s2, 4  ;;  %s1287_s5 = int_to_ptr.vmem [resolvable:$true] %s1286_s5 }
 0x170   :  { %v1968_v44 = vadd.f32 %v1488_v41, %v1965_v42  ;;  %s1612_s19 = scalar_lea.vmem %s1287_s5, 2048  ;;  %p1617_p1 = scmp.lt.s32.totalorder %s1287_s5, %s1287_s5 }
 0x171   :  { %1426 = vmatprep.subr.mxu1 %v402_v45  ;;  %p1613_p0 = scmp.ne.s32.totalorder %s1287_s5, %s1612_s19  ;;  %p1618_p2 = scmp.lt.s32.totalorder %s1612_s19, %s1612_s19 }
 0x172   :  { %v360_v46 = vpop.permute.xlu1 %359  ;;  %1427 = vmatpush3.msra.mxu1 %v402_v45  ;;  %v380_v48 = vpop.permute.xlu0 %379 }
 0x173   :  { %v401_v49 = vmul.f32 %v380_v48, %v305_v47  ;;  %v397_v33 = vmul.f32 %v360_v46, %v301_v31  ;;  %v1491_v45 = vpop.f32.mrf.mxu0  ;;  %v1971_v46 = vadd.f32 %v1965_v42, %v754_v43  ;;  %v835_v47 = vmul.f32 1.442695, %v1968_v44  ;;  %p1619_p3 = por %p1618_p2, %p1617_p1 }
 0x175   :  { %1428 = vmatprep.subr.mxu1 %v401_v49  ;;  %v764_v48 = vpop.f32.mrf.mxu0  ;;  %v833_v50 = vmul.f32 1.442695, %v1971_v46  ;;  %1548 = vpow2.f32 %v835_v47  ;;  %p1620_p4 = pnand %p1619_p3, %p1613_p0 }
 0x176   :  { %v350_v52 = vpop.permute.xlu1 %349  ;;  %1429 = vmatpush3.msra.mxu1 %v401_v49  ;;  %v365_v53 = vpop.permute.xlu0 %364 }
 0x177   :  { %1430 = vmatprep.subr.mxu1 %v400_v51  ;;  %v398_v55 = vmul.f32 %v365_v53, %v302_v38  ;;  %v395_v61 = vmul.f32 %v350_v52, %v299_v29  ;;  %1550 = vpow2.f32 %v833_v50 }
 0x178   :  { %1431 = vmatpush3.msra.mxu1 %v400_v51  ;;  %v1494_v51 = vpop.f32.mrf.mxu0 }
 0x179   :  { %1432 = vmatprep.subr.mxu1 %v399_v54 }
 0x17a   :  { %v340_v56 = vpop.permute.xlu1 %339  ;;  %1433 = vmatpush3.msra.mxu1 %v399_v54  ;;  %v355_v57 = vpop.permute.xlu0 %354 }
 0x17b   :  { %1434 = vmatprep.subr.mxu1 %v398_v55  ;;  %v396_v59 = vmul.f32 %v355_v57, %v300_v58  ;;  %v393_v1 = vmul.f32 %v340_v56, %v297_v27  ;;  %v774_v54 = vpop.f32.mrf.mxu0  ;;  %v1993_v57 = vadd.f32 %v1965_v42, %v764_v48 }
 0x17c   :  { %1435 = vmatpush3.msra.mxu1 %v398_v55  ;;  %v1988_v55 = vadd.f32 %v1491_v45, %v1965_v42 }
 0x17d   :  { %1436 = vmatprep.subr.mxu1 %v397_v33  ;;  %v1497_v31 = vpop.f32.mrf.mxu0 }
 0x17e   :  { %1437 = vmatpush3.msra.mxu1 %v397_v33  ;;  %v345_v60 = vpop.permute.xlu0 %344  ;;  %v330_v30 = vpop.permute.xlu1 %329  ;;  %v839_v33 = vmul.f32 1.442695, %v1988_v55 }
 0x17f   :  { %1438 = vmatprep.subr.mxu1 %v396_v59  ;;  %v394_v63 = vmul.f32 %v345_v60, %v298_v62  ;;  %v391_v5 = vmul.f32 %v330_v30, %v295_v25  ;;  %v784_v58 = vpop.f32.mrf.mxu0  ;;  %v837_v60 = vmul.f32 1.442695, %v1993_v57 }
 0x180   :  { %1439 = vmatpush3.msra.mxu1 %v396_v59  ;;  %1552 = vpow2.f32 %v839_v33 }
 0x181   :  { %1440 = vmatprep.subr.mxu1 %v395_v61  ;;  %1554 = vpow2.f32 %v837_v60 }
 0x182   :  { %1441 = vmatpush3.msra.mxu1 %v395_v61  ;;  %v335_v0 = vpop.permute.xlu0 %334  ;;  %v320_v3 = vpop.permute.xlu1 %319 }
 0x183   :  { %1442 = vmatprep.subr.mxu1 %v394_v63  ;;  %v392_v2 = vmul.f32 %v335_v0, %v296_v28  ;;  %v389_v8 = vmul.f32 %v320_v3, %v293_v23  ;;  %v1500_v61 = vpop.f32.mrf.mxu0  ;;  %v2005_v62 = vpop.eup %1548  ;;  %v2031_v23 = vadd.f32 %v1497_v31, %v1965_v42 }
 0x184   :  { %1443 = vmatpush3.msra.mxu1 %v394_v63  ;;  %v2011_v0 = vpop.eup %1550 }
 0x185   :  { %1444 = vmatprep.subr.mxu1 %v393_v1  ;;  %v794_v27 = vpop.f32.mrf.mxu0 }
 0x186   :  { %1445 = vmatpush3.msra.mxu1 %v393_v1  ;;  %v325_v4 = vpop.permute.xlu0 %324  ;;  %v310_v24 = vpop.permute.xlu1 %309  ;;  %v2014_v1 = vadd.f32 %v1494_v51, %v1965_v42 }
 0x187   :  { %1446 = vmatprep.subr.mxu1 %v392_v2  ;;  %v390_v6 = vmul.f32 %v325_v4, %v294_v26  ;;  %v387_v11 = vmul.f32 %v310_v24, %v291_v21  ;;  %v2024_v4 = vadd.f32 %v1965_v42, %v774_v54  ;;  %v2042_v21 = vadd.f32 %v1500_v61, %v1965_v42 }
 0x188   :  { %1447 = vmatpush3.msra.mxu1 %v392_v2  ;;  %v1503_v2 = vpop.f32.mrf.mxu0 }
 0x189   :  { %1448 = vmatprep.subr.mxu1 %v391_v5  ;;  %v841_v24 = vmul.f32 1.442695, %v2024_v4 }
 0x18a   :  { %1449 = vmatpush3.msra.mxu1 %v391_v5  ;;  %v315_v7 = vpop.permute.xlu0 %314 }
 0x18b   :  { %1450 = vmatprep.subr.mxu1 %v390_v6  ;;  %v388_v10 = vmul.f32 %v315_v7, %v292_v9  ;;  %v804_v7 = vpop.f32.mrf.mxu0  ;;  %v2037_v9 = vadd.f32 %v1965_v42, %v784_v58 }
 0x18c   :  { %1451 = vmatpush3.msra.mxu1 %v390_v6  ;;  %v843_v6 = vmul.f32 1.442695, %v2014_v1 }
 0x18d   :  { %1452 = vmatprep.subr.mxu1 %v389_v8 }
 0x18e   :  { %1453 = vmatpush3.msra.mxu1 %v389_v8 }
 0x18f   :  { %1454 = vmatprep.subr.mxu1 %v388_v10 }
 0x190   :  { %1455 = vmatpush3.msra.mxu1 %v388_v10 }
 0x191   :  { %1456 = vmatprep.subr.mxu1 %v387_v11 }
 0x192   :  { %1457 = vmatpush3.msra.mxu1 %v387_v11  ;;  %v847_v11 = vmul.f32 1.442695, %v2031_v23 }
 0x193   :  { %1459 = vmatmul.mubr.f32.vlgmr.msra.gmra.mxu1 %v420_v22  ;;  %v2047_v22 = vpop.eup %1552 }
 0x194   :  { %1461 = vmatprep.mubr.f32.mxu1 %v421_v19  ;;  %v2050_v19 = vadd.f32 %v1965_v42, %v794_v27 }
 0x197   :  { %1462 = vmatmul.mubr.f32.gmra.mxu1 %v422_v20 }
 0x198   :  { %1464 = vmatprep.mubr.f32.mxu1 %v423_v12 }
 0x19b   :  { %1465 = vmatmul.mubr.f32.gmra.mxu1 %v424_v13  ;;  %v845_v13 = vmul.f32 1.442695, %v2037_v9 }
 0x19c   :  { %1467 = vmatprep.mubr.f32.mxu1 %v425_v14 }
 0x19f   :  { %1468 = vmatmul.mubr.f32.gmra.mxu1 %v426_v15  ;;  %v2056_v15 = vpop.eup %1554 }
 0x1a0   :  { %1470 = vmatprep.mubr.f32.mxu1 %v427_v16  ;;  %v851_v16 = vmul.f32 1.442695, %v2042_v21 }
 0x1a3   :  { %1471 = vmatmul.mubr.f32.gmra.mxu1 %v428_v17 }
 0x1a4   :  { %1473 = vmatprep.mubr.f32.mxu1 %v429_v32  ;;  %v1506_v10 = vpop.f32.mrf.mxu0 }
 0x1a5   :  { %v2077_v45 = vadd.f32 %v1506_v10, %v1965_v42 }
 0x1a6   :  { %v814_v14 = vpop.f32.mrf.mxu0 }
 0x1a7   :  { %1474 = vmatmul.mubr.f32.gmra.mxu1 %v430_v34  ;;  %v2063_v34 = vadd.f32 %v1503_v2, %v1965_v42  ;;  %v2084_v51 = vadd.f32 %v1965_v42, %v814_v14  ;;  %v859_v58 = vmul.f32 1.442695, %v2077_v45 }
 0x1a8   :  { %1476 = vmatprep.mubr.f32.mxu1 %v431_v36  ;;  %v849_v36 = vmul.f32 1.442695, %v2050_v19  ;;  %v1509_v41 = vpop.f32.mrf.mxu0 }
 0x1a9   :  { %v855_v43 = vmul.f32 1.442695, %v2063_v34 }
 0x1ab   :  { %1477 = vmatmul.mubr.f32.gmra.mxu1 %v432_v37 }
 0x1ac   :  { %1479 = vmatprep.mubr.f32.mxu1 %v433_v39 }
 0x1af   :  { %1480 = vmatmul.mubr.f32.gmra.mxu1 %v434_v40  ;;  %v2071_v40 = vadd.f32 %v1965_v42, %v804_v7 }
 0x1b1   :  { %v853_v50 = vmul.f32 1.442695, %v2071_v40 }
 0x253   :  { %v1974_v49 = vpop.f32.mrf.mxu1 }
 0x254   :  { %952 = vperm.xlu1 %1515, %v1974_v49   ;;  %vm1154_vm2 = vcmp.ne.f32.partialorder %v1974_v49, 0.0  ;;  %v882_v28 = vmul.f32 %v2005_v62, %v1974_v49 }
 0x255   :  { %v1979_v35 = vpop.f32.mrf.mxu1  ;;  %v1170_v52 = vsel %vm1154_vm2, 1, %v1634_v18 }
 0x256   :  { %947 = vperm.xlu0 %1514, %v1979_v35   ;;  %vm1153_vm3 = vcmp.ne.f32.partialorder %v1979_v35, 0.0  ;;  %v881_v5 = vmul.f32 %v2011_v0, %v1979_v35  ;;  %1556 = vrcp.f32 %v882_v28 }
 0x257   :  { %v1984_v53 = vpop.f32.mrf.mxu1  ;;  %v1169_v38 = vsel %vm1153_vm3, 1, %v1634_v18 }
 0x258   :  { %1189 = vperm.xlu1 %1515, %v1170_v52   ;;  %vm1156_vm4 = vcmp.ne.f32.partialorder %v1984_v53, 0.0  ;;  %1558 = vrcp.f32 %v881_v5  ;;  %v884_v32 = vmul.f32 %v2047_v22, %v1984_v53  ;;  %v824_v52 = vpop.f32.mrf.mxu0 }
 0x259   :  { %v1990_v56 = vpop.f32.mrf.mxu1  ;;  %v1172_v59 = vsel %vm1156_vm4, 1, %v1634_v18  ;;  %1560 = vpow2.f32 %v843_v6  ;;  %v2096_v61 = vadd.f32 %v1965_v42, %v824_v52 }
 0x25a   :  { %1186 = vperm.xlu0 %1514, %v1169_v38   ;;  %vm1155_vm5 = vcmp.ne.f32.partialorder %v1990_v56, 0.0  ;;  %1562 = vpow2.f32 %v841_v24  ;;  %v883_v39 = vmul.f32 %v2056_v15, %v1990_v56  ;;  %v2087_v38 = vadd.f32 %v1509_v41, %v1965_v42 }
 0x25b   :  { %v2001_v29 = vpop.f32.mrf.mxu1  ;;  %v1171_v30 = vsel %vm1155_vm5, 1, %v1634_v18  ;;  %1564 = vpow2.f32 %v847_v11  ;;  %v861_v6 = vmul.f32 1.442695, %v2096_v61 }
 0x25c   :  { %962 = vperm.xlu1 %1515, %v1984_v53   ;;  %vm1158_vm6 = vcmp.ne.f32.partialorder %v2001_v29, 0.0  ;;  %1566 = vpow2.f32 %v845_v13  ;;  %v863_v2 = vmul.f32 1.442695, %v2087_v38 }
 0x25d   :  { %v2007_v63 = vpop.f32.mrf.mxu1  ;;  %v1174_v25 = vsel %vm1158_vm6, 1, %v1634_v18  ;;  %1568 = vpow2.f32 %v851_v16 }
 0x25e   :  { %957 = vperm.xlu0 %1514, %v1990_v56   ;;  %vm1157_vm7 = vcmp.ne.f32.partialorder %v2007_v63, 0.0  ;;  %1570 = vrcp.f32 %v884_v32 }
 0x25f   :  { %v2021_v3 = vpop.f32.mrf.mxu1  ;;  %v1173_v26 = vsel %vm1157_vm7, 1, %v1634_v18  ;;  %1572 = vpow2.f32 %v849_v36 }
 0x260   :  { %1195 = vperm.xlu1 %1515, %v1172_v59   ;;  %vm1160_vm8 = vcmp.ne.f32.partialorder %v2021_v3, 0.0  ;;  %1574 = vrcp.f32 %v883_v39 }
 0x261   :  { %v2033_v8 = vpop.f32.mrf.mxu1  ;;  %v1176_v20 = vsel %vm1160_vm8, 1, %v1634_v18  ;;  %1576 = vpow2.f32 %v855_v43 }
 0x262   :  { %1192 = vperm.xlu0 %1514, %v1171_v30   ;;  %vm1159_vm9 = vcmp.ne.f32.partialorder %v2033_v8, 0.0  ;;  %1578 = vpow2.f32 %v853_v50  ;;  %v857_v30 = vmul.f32 1.442695, %v2084_v51 }
 0x263   :  { %v2053_v12 = vpop.f32.mrf.mxu1  ;;  %v1175_v17 = vsel %vm1159_vm9, 1, %v1634_v18  ;;  %v1557_v47 = vpop.eup %1556  ;;  %1580 = vpow2.f32 %v859_v58 }
 0x264   :  { %972 = vperm.xlu1 %1515, %v2001_v29   ;;  %vm1162_vm10 = vcmp.ne.f32.partialorder %v2053_v12, 0.0  ;;  %v914_v59 = vadd.f32 1e-10, %v1557_v47  ;;  %1582 = vpow2.f32 %v857_v30 }
 0x265   :  { %v2066_v37 = vpop.f32.mrf.mxu1  ;;  %v1178_v48 = vsel %vm1162_vm10, 1, %v1634_v18  ;;  %v1559_v54 = vpop.eup %1558  ;;  %1584 = vpow2.f32 %v863_v2 }
 0x266   :  { %967 = vperm.xlu0 %1514, %v2007_v63   ;;  %vm1161_vm11 = vcmp.ne.f32.partialorder %v2066_v37, 0.0  ;;  %v2093_v60 = vpop.eup %1560  ;;  %v913_v27 = vadd.f32 1e-10, %v1559_v54  ;;  %v930_v42 = vmul.f32 %v2005_v62, %v914_v59 }
 0x267   :  { %v2089_v31 = vpop.f32.mrf.mxu1  ;;  %v1177_v33 = vsel %vm1161_vm11, 1, %v1634_v18  ;;  %v2100_v28 = vpop.eup %1562  ;;  %v886_v5 = vmul.f32 %v2093_v60, %v2001_v29 }
 0x268   :  { %1201 = vperm.xlu1 %1515, %v1174_v25   ;;  %v885_v7 = vmul.f32 %v2100_v28, %v2007_v63  ;;  %v929_v24 = vmul.f32 %v2011_v0, %v913_v27  ;;  %vm1164_vm12 = vcmp.ne.f32.partialorder %v2089_v31, 0.0 }
 0x269   :  { %v2103_v25 = vpop.f32.mrf.mxu1  ;;  %1586 = vrcp.f32 %v886_v5  ;;  %v1180_v13 = vsel %vm1164_vm12, 1, %v1634_v18 }
 0x26a   :  { %1198 = vperm.xlu0 %1514, %v1173_v26   ;;  %v2109_v26 = vpop.eup %1564  ;;  %vm1163_vm13 = vcmp.ne.f32.partialorder %v2103_v25, 0.0  ;;  %1588 = vpow2.f32 %v861_v6 }
 0x26b   :  { %v2116_v10 = vpop.eup %1566  ;;  %v888_v62 = vmul.f32 %v2109_v26, %v2021_v3  ;;  %1590 = vrcp.f32 %v885_v7  ;;  %v1179_v32 = vsel %vm1163_vm13, 1, %v1634_v18 }
 0x26c   :  { %982 = vperm.xlu1 %1515, %v2021_v3   ;;  %v2118_v11 = vpop.eup %1568  ;;  %v887_v0 = vmul.f32 %v2116_v10, %v2033_v8 }
 0x26d   :  { %1592 = vrcp.f32 %v888_v62  ;;  %v890_v36 = vmul.f32 %v2118_v11, %v2053_v12 }
 0x26e   :  { %977 = vperm.xlu0 %1514, %v2033_v8   ;;  %1594 = vrcp.f32 %v887_v0 }
 0x26f   :  { %1596 = vrcp.f32 %v890_v36 }
 0x270   :  { %1207 = vperm.xlu1 %1515, %v1176_v20   ;;  %v1571_v20 = vpop.eup %1570 }
 0x271   :  { %v2124_v14 = vpop.eup %1572  ;;  %v916_v39 = vadd.f32 1e-10, %v1571_v20 }
 0x272   :  { %1204 = vperm.xlu0 %1514, %v1175_v17   ;;  %v1575_v16 = vpop.eup %1574  ;;  %v2128_v17 = vpop.f32.mrf.mxu1  ;;  %v889_v43 = vmul.f32 %v2124_v14, %v2066_v37 }
 0x273   :  { %v2133_v41 = vpop.eup %1576  ;;  %v915_v47 = vadd.f32 1e-10, %v1575_v16  ;;  %v932_v54 = vmul.f32 %v2047_v22, %v916_v39  ;;  %vm1166_vm14 = vcmp.ne.f32.partialorder %v2128_v17, 0.0 }
 0x274   :  { %992 = vperm.xlu1 %1515, %v2053_v12   ;;  %v2140_v50 = vpop.f32.mrf.mxu1  ;;  %v892_v52 = vmul.f32 %v2133_v41, %v2089_v31  ;;  %1598 = vrcp.f32 %v889_v43 }
 0x275   :  { %v931_v59 = vmul.f32 %v2056_v15, %v915_v47  ;;  %vm1165_vm15 = vcmp.ne.f32.partialorder %v2140_v50, 0.0 }
 0x276   :  { %987 = vperm.xlu0 %1514, %v2066_v37   ;;  %v2154_v27 = vpop.f32.mrf.mxu1  ;;  %1600 = vrcp.f32 %v892_v52  ;;  %v1181_v62 = vsel %vm1165_vm15, 1, %v1634_v18 }
 0x277   :  { %vm1168_vm0 = vcmp.ne.f32.partialorder %v2154_v27, 0.0 }
 0x278   :  { %1213 = vperm.xlu1 %1515, %v1178_v48   ;;  %v2138_v48 = vpop.eup %1578 }
 0x279   :  { %v891_v58 = vmul.f32 %v2138_v48, %v2103_v25 }
 0x27a   :  { %1210 = vperm.xlu0 %1514, %v1177_v33   ;;  %v2146_v33 = vpop.eup %1580 }
 0x27b   :  { %v2152_v30 = vpop.eup %1582  ;;  %v894_v22 = vmul.f32 %v2146_v33, %v2128_v17  ;;  %1602 = vrcp.f32 %v891_v58 }
 0x27c   :  { %1002 = vperm.xlu1 %1515, %v2089_v31   ;;  %v2156_v2 = vpop.eup %1584  ;;  %v893_v15 = vmul.f32 %v2152_v30, %v2140_v50 }
 0x27d   :  { %v1587_v5 = vpop.eup %1586  ;;  %1604 = vrcp.f32 %v894_v22  ;;  %v896_v20 = vmul.f32 %v2156_v2, %v2154_v27 }
 0x27e   :  { %997 = vperm.xlu0 %1514, %v2103_v25   ;;  %v1589_v6 = vpop.eup %1588  ;;  %1606 = vrcp.f32 %v893_v15 }
 0x27f   :  { %v1591_v7 = vpop.eup %1590  ;;  %1608 = vrcp.f32 %v896_v20 }
 0x280   :  { %1064 = vperm.xlu1 %1515, %v930_v42   ;;  %v1182_v42 = vsel %vm1166_vm14, 1, %v1634_v18  ;;  %v1593_v0 = vpop.eup %1592 }
 0x281   :  { %v1595_v36 = vpop.eup %1594  ;;  %v920_v43 = vadd.f32 1e-10, %v1593_v0 }
 0x282   :  { %1059 = vperm.xlu0 %1514, %v929_v24   ;;  %v2164_v24 = vpop.f32.mrf.mxu1  ;;  %v1597_v47 = vpop.eup %1596 }
 0x283   :  { %v895_v16 = vmul.f32 %v1589_v6, %v2164_v24  ;;  %v1599_v58 = vpop.eup %1598  ;;  %v922_v22 = vadd.f32 1e-10, %v1597_v47  ;;  %vm1167_vm1 = vcmp.ne.f32.partialorder %v2164_v24, 0.0 }
 0x284   :  { %1219 = vperm.xlu1 %1515, %v1180_v13   ;;  %v918_v13 = vadd.f32 1e-10, %v1587_v5  ;;  %v1601_v5 = vpop.eup %1600  ;;  %v921_v15 = vadd.f32 1e-10, %v1599_v58 }
 0x285   :  { %1610 = vrcp.f32 %v895_v16 }
 0x286   :  { %1216 = vperm.xlu0 %1514, %v1179_v32   ;;  %v917_v32 = vadd.f32 1e-10, %v1591_v7  ;;  %v934_v39 = vmul.f32 %v2093_v60, %v918_v13  ;;  %v938_v60 = vmul.f32 %v2118_v11, %v922_v22 }
 0x288   :  { %1012 = vperm.xlu1 %1515, %v2128_v17   ;;  %v933_v52 = vmul.f32 %v2100_v28, %v917_v32  ;;  %v1603_v7 = vpop.eup %1602  ;;  %v937_v28 = vmul.f32 %v2124_v14, %v921_v15 }
 0x289   :  { %v923_v13 = vadd.f32 1e-10, %v1603_v7 }
 0x28a   :  { %1007 = vperm.xlu0 %1514, %v2140_v50   ;;  %v1605_v20 = vpop.eup %1604 }
 0x28b   :  { %v1607_v0 = vpop.eup %1606  ;;  %v926_v16 = vadd.f32 1e-10, %v1605_v20 }
 0x28c   :  { %1074 = vperm.xlu1 %1515, %v932_v54   ;;  %v919_v54 = vadd.f32 1e-10, %v1595_v36  ;;  %v1609_v32 = vpop.eup %1608  ;;  %v925_v36 = vadd.f32 1e-10, %v1607_v0 }
 0x28d   :  { %v942_v11 = vmul.f32 %v2146_v33, %v926_v16  ;;  %v1183_v33 = vsel %vm1167_vm1, 1, %v1634_v18 }
 0x28e   :  { %1069 = vperm.xlu0 %1514, %v931_v59   ;;  %v936_v59 = vmul.f32 %v2109_v26, %v920_v43  ;;  %v928_v43 = vadd.f32 1e-10, %v1609_v32  ;;  %v941_v47 = vmul.f32 %v2152_v30, %v925_v36 }
 0x290   :  { %1225 = vperm.xlu1 %1515, %v1182_v42   ;;  %v935_v42 = vmul.f32 %v2116_v10, %v919_v54  ;;  %v939_v10 = vmul.f32 %v2138_v48, %v923_v13  ;;  %v1184_v48 = vsel %vm1168_vm0, 1, %v1634_v18 }
 0x292   :  { %1222 = vperm.xlu0 %1514, %v1181_v62   ;;  %v924_v62 = vadd.f32 1e-10, %v1601_v5 }
 0x294   :  { %1022 = vperm.xlu1 %1515, %v2154_v27   ;;  %v940_v26 = vmul.f32 %v2133_v41, %v924_v62 }
 0x296   :  { %1017 = vperm.xlu0 %1514, %v2164_v24  }
 0x298   :  { %1084 = vperm.xlu1 %1515, %v934_v39   ;;  %v1611_v39 = vpop.eup %1610 }
 0x299   :  { %v927_v14 = vadd.f32 1e-10, %v1611_v39 }
 0x29a   :  { %1079 = vperm.xlu0 %1514, %v933_v52   ;;  %v944_v52 = vmul.f32 %v2156_v2, %v928_v43 }
 0x29b   :  { %v943_v41 = vmul.f32 %v1589_v6, %v927_v14 }
 0x29c   :  { %1094 = vperm.xlu1 %1515, %v936_v59  }
 0x29e   :  { %1089 = vperm.xlu0 %1514, %v935_v42  }
 0x2a0   :  { %1104 = vperm.xlu1 %1515, %v938_v60  }
 0x2a2   :  { %1099 = vperm.xlu0 %1514, %v937_v28  }
 0x2a4   :  { %1114 = vperm.xlu1 %1515, %v940_v26  }
 0x2a6   :  { %1109 = vperm.xlu0 %1514, %v939_v10  }
 0x2a8   :  { %1124 = vperm.xlu1 %1515, %v942_v11  }
 0x2aa   :  { %1119 = vperm.xlu0 %1514, %v941_v47  }
 0x2ac   :  { %1134 = vperm.xlu1 %1515, %v944_v52  }
 0x2ae   :  { %1129 = vperm.xlu0 %1514, %v943_v41  }
 0x2b0   :  { %1231 = vperm.xlu1 %1515, %v1184_v48  }
 0x2b2   :  { %1228 = vperm.xlu0 %1514, %v1183_v33  }
 0x2cf   :  { %v953_v54 = vpop.permute.xlu1 %952 }
 0x2d0   :  { %v1026_v32 = vmul.f32 %v953_v54, %v1968_v44 }
 0x2d1   :  { %v948_v58 = vpop.permute.xlu0 %947 }
 0x2d2   :  { %v1025_v36 = vmul.f32 %v948_v58, %v1971_v46  ;;  %v1042_v11 = vadd.f32 %v1974_v49, %v1026_v32 }
 0x2d3   :  { %v1190_v30 = vpop.permute.xlu1 %1189 }
 0x2d4   :  { %v1041_v14 = vadd.f32 %v1025_v36, %v1979_v35  ;;  %vm1234_vm2 = vcmp.eq.s32.totalorder %v1190_v30, 1 }
 0x2d5   :  { %v1187_v59 = vpop.permute.xlu0 %1186 }
 0x2d6   :  { %vm1233_vm3 = vcmp.eq.s32.totalorder %v1187_v59, 1 }
 0x2d7   :  { %v963_v22 = vpop.permute.xlu1 %962 }
 0x2d8   :  { %v1028_v46 = vmul.f32 %v963_v22, %v1988_v55 }
 0x2d9   :  { %v958_v5 = vpop.permute.xlu0 %957 }
 0x2da   :  { %v1027_v49 = vmul.f32 %v958_v5, %v1993_v57  ;;  %v1044_v35 = vadd.f32 %v1984_v53, %v1028_v46 }
 0x2db   :  { %v1196_v2 = vpop.permute.xlu1 %1195 }
 0x2dc   :  { %vm1236_vm4 = vcmp.eq.s32.totalorder %v1196_v2, 1 }
 0x2dd   :  { %v1193_v42 = vpop.permute.xlu0 %1192 }
 0x2de   :  { %vm1235_vm5 = vcmp.eq.s32.totalorder %v1193_v42, 1 }
 0x2df   :  { %v973_v6 = vpop.permute.xlu1 %972 }
 0x2e0   :  { %v1030_v57 = vmul.f32 %v973_v6, %v2014_v1 }
 0x2e1   :  { %v968_v15 = vpop.permute.xlu0 %967 }
 0x2e2   :  { %v1029_v53 = vmul.f32 %v968_v15, %v2024_v4  ;;  %v1046_v2 = vadd.f32 %v2001_v29, %v1030_v57 }
 0x2e3   :  { %v1202_v7 = vpop.permute.xlu1 %1201 }
 0x2e4   :  { %vm1238_vm6 = vcmp.eq.s32.totalorder %v1202_v7, 1 }
 0x2e5   :  { %v2187_v60 = vpop.permute.xlu0 %1198 }
 0x2e6   :  { %vm1237_vm7 = vcmp.eq.s32.totalorder %v2187_v60, 1 }
 0x2e7   :  { %v983_v62 = vpop.permute.xlu1 %982 }
 0x2e9   :  { %v978_v20 = vpop.permute.xlu0 %977 }
 0x2eb   :  { %v2189_v28 = vpop.permute.xlu1 %1207 }
 0x2ec   :  { %vm1240_vm8 = vcmp.eq.s32.totalorder %v2189_v28, 1 }
 0x2ed   :  { %v2191_v13 = vpop.permute.xlu0 %1204 }
 0x2ee   :  { %vm1239_vm9 = vcmp.eq.s32.totalorder %v2191_v13, 1 }
 0x2ef   :  { %v993_v18 = vpop.permute.xlu1 %992 }
 0x2f0   :  { %v1034_v1 = vmul.f32 %v993_v18, %v2042_v21 }
 0x2f1   :  { %v988_v0 = vpop.permute.xlu0 %987 }
 0x2f2   :  { %v1033_v29 = vmul.f32 %v988_v0, %v2050_v19 }
 0x2f3   :  { %v2193_v26 = vpop.permute.xlu1 %1213 }
 0x2f4   :  { %vm1242_vm10 = vcmp.eq.s32.totalorder %v2193_v26, 1 }
 0x2f5   :  { %v2195_v16 = vpop.permute.xlu0 %1210 }
 0x2f6   :  { %vm1241_vm11 = vcmp.eq.s32.totalorder %v2195_v16, 1 }
 0x2f7   :  { %v1003_v10 = vpop.permute.xlu1 %1002 }
 0x2f8   :  { %v1036_v21 = vmul.f32 %v1003_v10, %v2063_v34 }
 0x2f9   :  { %v2199_v39 = vpop.permute.xlu0 %997 }
 0x2fa   :  { %v1035_v19 = vmul.f32 %v2199_v39, %v2071_v40 }
 0x2fb   :  { %v1065_v43 = vpop.permute.xlu1 %1064 }
 0x2fc   :  { %v1138_v47 = vmul.f32 %v1065_v43, %v1042_v11  ;;  %v1043_v11 = vadd.f32 %v1027_v49, %v1990_v56  ;;  %v1032_v56 = vmul.f32 %v983_v62, %v2031_v23 }
 0x2fd   :  { %v1060_v52 = vpop.permute.xlu0 %1059 }
 0x2fe   :  { %v1250_v41 = vsel %vm1234_vm2, %v1138_v47, 0.0  ;;  %v1137_v48 = vmul.f32 %v1060_v52, %v1041_v14  ;;  %v1048_v4 = vadd.f32 %v2021_v3, %v1032_v56  ;;  %v1050_v3 = vadd.f32 %v2053_v12, %v1034_v1 }
 0x2ff   :  { %1266 = vst [vmem:[#allocation3 + $0x8] sm:$0xff] %v1250_v41  ;;  %v2203_v33 = vpop.permute.xlu1 %1219  ;;  %v1031_v41 = vmul.f32 %v978_v20, %v2037_v9  ;;  %v1052_v12 = vadd.f32 %v2089_v31, %v1036_v21 }
 0x300   :  { %v1249_v44 = vsel %vm1233_vm3, %v1137_v48, 0.0  ;;  %vm1244_vm12 = vcmp.eq.s32.totalorder %v2203_v33, 1 }
 0x301   :  { %1265 = vst [vmem:[#allocation3] sm:$0xff] %v1249_v44  ;;  %v2205_v54 = vpop.permute.xlu0 %1216  ;;  %v1045_v44 = vadd.f32 %v1029_v53, %v2007_v63  ;;  %v1047_v9 = vadd.f32 %v1031_v41, %v2033_v8  ;;  %v1049_v8 = vadd.f32 %v1033_v29, %v2066_v37  ;;  %v1051_v37 = vadd.f32 %v1035_v19, %v2103_v25 }
 0x302   :  { %vm1243_vm13 = vcmp.eq.s32.totalorder %v2205_v54, 1 }
 0x303   :  { %v1013_v58 = vpop.permute.xlu1 %1012 }
 0x304   :  { %v1038_v34 = vmul.f32 %v1013_v58, %v2077_v45 }
 0x305   :  { %v1008_v32 = vpop.permute.xlu0 %1007 }
 0x306   :  { %v1037_v40 = vmul.f32 %v1008_v32, %v2084_v51  ;;  %v1054_v58 = vadd.f32 %v2128_v17, %v1038_v34 }
 0x307   :  { %v1075_v30 = vpop.permute.xlu1 %1074 }
 0x308   :  { %v1140_v36 = vmul.f32 %v1075_v30, %v1044_v35  ;;  %v1053_v51 = vadd.f32 %v1037_v40, %v2140_v50 }
 0x309   :  { %v1070_v59 = vpop.permute.xlu0 %1069 }
 0x30a   :  { %v1252_v43 = vsel %vm1236_vm4, %v1140_v36, 0.0  ;;  %v1139_v47 = vmul.f32 %v1070_v59, %v1043_v11 }
 0x30b   :  { %1268 = vst [vmem:[#allocation3 + $0x18] sm:$0xff] %v1252_v43  ;;  %v2211_v14 = vpop.permute.xlu1 %1225 }
 0x30c   :  { %v1251_v52 = vsel %vm1235_vm5, %v1139_v47, 0.0  ;;  %vm1246_vm14 = vcmp.eq.s32.totalorder %v2211_v14, 1 }
 0x30d   :  { %1267 = vst [vmem:[#allocation3 + $0x10] sm:$0xff] %v1251_v52  ;;  %v2213_v55 = vpop.permute.xlu0 %1222 }
 0x30e   :  { %vm1245_vm15 = vcmp.eq.s32.totalorder %v2213_v55, 1 }
 0x30f   :  { %v2216_v22 = vpop.permute.xlu1 %1022 }
 0x310   :  { %v1040_v25 = vmul.f32 %v2216_v22, %v2087_v38 }
 0x311   :  { %v2219_v5 = vpop.permute.xlu0 %1017 }
 0x312   :  { %v1039_v17 = vmul.f32 %v2219_v5, %v2096_v61  ;;  %v1056_v50 = vadd.f32 %v2154_v27, %v1040_v25 }
 0x313   :  { %v1085_v42 = vpop.permute.xlu1 %1084 }
 0x314   :  { %v1142_v48 = vmul.f32 %v1085_v42, %v1046_v2  ;;  %v1055_v52 = vadd.f32 %v1039_v17, %v2164_v24 }
 0x315   :  { %v1080_v46 = vpop.permute.xlu0 %1079 }
 0x316   :  { %v1254_v6 = vsel %vm1238_vm6, %v1142_v48, 0.0  ;;  %v1141_v49 = vmul.f32 %v1080_v46, %v1045_v44 }
 0x317   :  { %1270 = vst [vmem:[#allocation3 + $0x28] sm:$0xff] %v1254_v6  ;;  %v1095_v23 = vpop.permute.xlu1 %1094 }
 0x318   :  { %v1253_v15 = vsel %vm1237_vm7, %v1141_v49, 0.0  ;;  %v1144_v62 = vmul.f32 %v1095_v23, %v1048_v4 }
 0x319   :  { %1269 = vst [vmem:[#allocation3 + $0x20] sm:$0xff] %v1253_v15  ;;  %v1090_v63 = vpop.permute.xlu0 %1089 }
 0x31a   :  { %v1256_v7 = vsel %vm1240_vm8, %v1144_v62, 0.0  ;;  %v1143_v20 = vmul.f32 %v1090_v63, %v1047_v9 }
 0x31b   :  { %1272 = vst [vmem:[#allocation3 + $0x38] sm:$0xff] %v1256_v7  ;;  %v1105_v60 = vpop.permute.xlu1 %1104 }
 0x31c   :  { %v1255_v18 = vsel %vm1239_vm9, %v1143_v20, 0.0  ;;  %v1146_v0 = vmul.f32 %v1105_v60, %v1050_v3 }
 0x31d   :  { %1271 = vst [vmem:[#allocation3 + $0x30] sm:$0xff] %v1255_v18  ;;  %v1100_v28 = vpop.permute.xlu0 %1099 }
 0x31e   :  { %v1258_v10 = vsel %vm1242_vm10, %v1146_v0, 0.0  ;;  %v1145_v35 = vmul.f32 %v1100_v28, %v1049_v8 }
 0x31f   :  { %1274 = vst [vmem:[#allocation3 + $0x48] sm:$0xff] %v1258_v10  ;;  %v1115_v13 = vpop.permute.xlu1 %1114 }
 0x320   :  { %v1257_v39 = vsel %vm1241_vm11, %v1145_v35, 0.0  ;;  %v1148_v30 = vmul.f32 %v1115_v13, %v1052_v12 }
 0x321   :  { %1273 = vst [vmem:[#allocation3 + $0x40] sm:$0xff] %v1257_v39  ;;  %v1110_v26 = vpop.permute.xlu0 %1109 }
 0x322   :  { %v1260_v36 = vsel %vm1244_vm12, %v1148_v30, 0.0  ;;  %v1147_v45 = vmul.f32 %v1110_v26, %v1051_v37 }
 0x323   :  { %1276 = vst [vmem:[#allocation3 + $0x58] sm:$0xff] %v1260_v36  ;;  %v1125_v31 = vpop.permute.xlu1 %1124 }
 0x324   :  { %v1259_v16 = vsel %vm1243_vm13, %v1147_v45, 0.0  ;;  %v1150_v11 = vmul.f32 %v1125_v31, %v1054_v58 }
 0x325   :  { %1275 = vst [vmem:[#allocation3 + $0x50] sm:$0xff] %v1259_v16  ;;  %v1120_v33 = vpop.permute.xlu0 %1119 }
 0x326   :  { %v1262_v32 = vsel %vm1246_vm14, %v1150_v11, 0.0  ;;  %v1149_v59 = vmul.f32 %v1120_v33, %v1053_v51 }
 0x327   :  { %1278 = vst [vmem:[#allocation3 + $0x68] sm:$0xff] %v1262_v32  ;;  %v1135_v54 = vpop.permute.xlu1 %1134 }
 0x328   :  { %v1261_v43 = vsel %vm1245_vm15, %v1149_v59, 0.0  ;;  %v1152_v14 = vmul.f32 %v1135_v54, %v1056_v50 }
 0x329   :  { %1277 = vst [vmem:[#allocation3 + $0x60] sm:$0xff] %v1261_v43  ;;  %v1130_v47 = vpop.permute.xlu0 %1129 }
 0x32a   :  { %v1151_v57 = vmul.f32 %v1130_v47, %v1055_v52 }
 0x32b   :  { %v1232_v38 = vpop.permute.xlu1 %1231 }
 0x32c   :  { %vm1248_vm0 = vcmp.eq.s32.totalorder %v1232_v38, 1 }
 0x32d   :  { %v1264_v22 = vsel %vm1248_vm0, %v1152_v14, 0.0  ;;  %v1229_v55 = vpop.permute.xlu0 %1228 }
 0x32e   :  { %1280 = vst [vmem:[#allocation3 + $0x78] sm:$0xff] %v1264_v22  ;;  %vm1247_vm1 = vcmp.eq.s32.totalorder %v1229_v55, 1 }
 0x32f   :  { %v1263_v61 = vsel %vm1247_vm1, %v1151_v57, 0.0 }
 0x330   :  { %1279 = vst [vmem:[#allocation3 + $0x70] sm:$0xff] %v1263_v61 }
 0x331   :  { %1623 = shalt.err (!%p1620_p4)
}
 0x332   :  { %s1636_s20 = smov 128   ;;  %s1637_s21 = smov 8  }
 0x333   :  { %1292 = dma.vmem_to_hbm [thread:$0]  %s1287_s5, 2048, %s2264_s6, [#allocation4], %s1636_s20, %s1636_s20, %s1637_s21  }
 0x334   :  { %1632 = dma.done.wait [#allocation4], 2048  }
 0x335   :  { %1633 = vsyncadd [#allocation4], 4294965248 }
 0x336   :  { %1296 = vsyncpa [#allocation4], 1 }

</bundles_post_ra>
